<compile_context>
chip_gen: v7x
topology: tpu7x:2x2x1
jax: 0.10.0
libtpu: 0.0.40
codegen_flags: <defaults>
</compile_context>

<pallas_src>
import functools

import jax
import jax.numpy as jnp
from jax.experimental import pallas as pl
from jax.experimental.pallas import tpu as pltpu


def _round_up(x, m):
    return (x + m - 1) // m * m


# ----------------------------- Pallas kernels --------------------------------

def _gcn_b_resident_kernel(a_ref, b_ref, o_ref):
    """One (tm, Np) output slab; B (embeds) is fully VMEM-resident."""
    a = a_ref[...].astype(jnp.bfloat16)          # cast in-kernel, no HBM pre-pass
    o_ref[...] = jnp.dot(a, b_ref[...],
                         preferred_element_type=jnp.float32).astype(o_ref.dtype)


def _gcn_tiled_kernel(a_ref, b_ref, o_ref):
    """Fallback 3-D grid: accumulate straight into the resident f32 out block."""
    @pl.when(pl.program_id(2) == 0)
    def _init():
        o_ref[...] = jnp.zeros_like(o_ref)

    o_ref[...] += jnp.dot(a_ref[...].astype(jnp.bfloat16), b_ref[...],
                          preferred_element_type=jnp.float32)


# ------------------------------ tile selection --------------------------------

def _pick_tm(mp):
    """Row-tile: full array when tiny, else >=2 blocks (v7x has 2 TensorCores)
    with <=12.5% padding waste, preferring large MXU-friendly tiles."""
    if mp <= 256:
        return mp
    for tm in (1024, 512, 256):
        padded = _round_up(mp, tm)
        if padded // tm >= 2 and (padded - mp) / padded <= 0.125:
            return tm
    # Fall back to an exact two-way split aligned to the 8-row sublane tile.
    return _round_up((mp + 1) // 2, 8)


# ------------------------------- wrappers -------------------------------------

_B_RESIDENT_LIMIT_BYTES = 8 * 1024 * 1024   # resident bf16 embeds budget


def _gcn_b_resident(adj, embeds, M, K, N, Mp, Kp, Np):
    tm = _pick_tm(Mp)
    Mp = _round_up(Mp, tm)

    a = adj
    if Mp != M or Kp != K:
        a = jnp.pad(a, ((0, Mp - M), (0, Kp - K)))      # stays f32 (zero pad)
    b = embeds.astype(jnp.bfloat16)
    if Kp != K or Np != N:
        b = jnp.pad(b, ((0, Kp - K), (0, Np - N)))

    grid = (Mp // tm,)

    # double-buffered f32 A tiles + (up to) double-buffered resident bf16 B
    # + double-buffered f32 output tiles; generous 2x headroom, clamped so it
    # stays safe on v7x's 64 MiB/TC VMEM.
    vmem_bytes = 2 * tm * Kp * 4 + 2 * Kp * Np * 2 + 2 * tm * Np * 4
    vmem_limit = int(min(max(2 * vmem_bytes, 16 * 1024 * 1024),
                         48 * 1024 * 1024))

    cost = pl.CostEstimate(
        flops=2 * Mp * Kp * Np,
        bytes_accessed=Mp * Kp * 4 + Kp * Np * 2 + Mp * Np * 4,
        transcendentals=0)

    out_padded = pl.pallas_call(
        _gcn_b_resident_kernel,
        out_shape=jax.ShapeDtypeStruct((Mp, Np), jnp.float32),
        grid_spec=pltpu.PrefetchScalarGridSpec(
            num_scalar_prefetch=0,
            grid=grid,
            in_specs=[
                pl.BlockSpec((tm, Kp), lambda i: (i, 0)),     # streamed adj rows
                pl.BlockSpec((Kp, Np), lambda i: (0, 0)),     # VMEM-resident embeds
            ],
            out_specs=pl.BlockSpec((tm, Np), lambda i: (i, 0)),
        ),
        compiler_params=pltpu.CompilerParams(
            dimension_semantics=("parallel",),
            vmem_limit_bytes=vmem_limit,
        ),
        cost_estimate=cost,
    )(a, b)

    return out_padded[:M, :N]


def _gcn_tiled(adj, embeds, M, K, N, Mp, Kp, Np):
    tm = 256 if Mp > 256 else Mp
    tn = 256 if Np > 256 else Np
    tk = 512 if Kp > 512 else Kp
    Mp = _round_up(Mp, tm)
    Np = _round_up(Np, tn)
    Kp = _round_up(Kp, tk)

    a = adj
    if Mp != M or Kp != K:
        a = jnp.pad(a, ((0, Mp - M), (0, Kp - K)))
    b = embeds.astype(jnp.bfloat16)
    if Kp != K or Np != N:
        b = jnp.pad(b, ((0, Kp - K), (0, Np - N)))

    grid = (Mp // tm, Np // tn, Kp // tk)

    cost = pl.CostEstimate(
        flops=2 * Mp * Kp * Np,
        bytes_accessed=(Mp * Kp * 4 * (Np // tn)
                        + Kp * Np * 2 * (Mp // tm)
                        + Mp * Np * 4),
        transcendentals=0)

    vmem_bytes = 2 * tm * tk * 4 + 2 * tk * tn * 2 + 2 * tm * tn * 4
    vmem_limit = int(min(max(2 * vmem_bytes, 16 * 1024 * 1024),
                         48 * 1024 * 1024))

    out_padded = pl.pallas_call(
        _gcn_tiled_kernel,
        out_shape=jax.ShapeDtypeStruct((Mp, Np), jnp.float32),
        grid_spec=pltpu.PrefetchScalarGridSpec(
            num_scalar_prefetch=0,
            grid=grid,
            in_specs=[
                pl.BlockSpec((tm, tk), lambda i, j, k: (i, k)),
                pl.BlockSpec((tk, tn), lambda i, j, k: (k, j)),
            ],
            out_specs=pl.BlockSpec((tm, tn), lambda i, j, k: (i, j)),
        ),
        compiler_params=pltpu.CompilerParams(
            dimension_semantics=("parallel", "parallel", "arbitrary"),
            vmem_limit_bytes=vmem_limit,
        ),
        cost_estimate=cost,
    )(a, b)

    return out_padded[:M, :N]


@jax.jit
def gcn_layer(adj, embeds):
    """GCNLayer.forward(adj, embeds) = adj @ embeds (dense-ified spmm)."""
    M, K = adj.shape
    K2, N = embeds.shape
    assert K == K2, (adj.shape, embeds.shape)

    Mp = _round_up(M, 8)
    Kp = _round_up(K, 128)
    Np = _round_up(N, 128)

    if Kp * Np * 2 <= _B_RESIDENT_LIMIT_BYTES:
        return _gcn_b_resident(adj, embeds, M, K, N, Mp, Kp, Np)
    return _gcn_tiled(adj, embeds, M, K, N, Mp, Kp, Np)


# --------------------------------- main ---------------------------------------

if __name__ == "__main__":
    key = jax.random.PRNGKey(0)
    k_adj, k_emb, k_adj2, k_emb2 = jax.random.split(key, 4)

    # --- small shapes consistent with the surrounding model -------------------
    n_user, n_item, latdim = 8, 8, 32
    N_ui = n_user + n_item

    adj_mask = jax.random.bernoulli(k_adj, 0.3, (N_ui, N_ui)).astype(jnp.float32)
    adj = adj_mask / jnp.maximum(adj_mask.sum(axis=1, keepdims=True), 1.0)
    embeds = jax.random.normal(k_emb, (N_ui, latdim), jnp.float32) * 0.1

    out = gcn_layer(adj, embeds)
    jax.block_until_ready(out)

    ref = adj @ embeds
    assert out.shape == (N_ui, latdim)
    assert bool(jnp.all(jnp.isfinite(out)))
    assert bool(jnp.allclose(out, ref, rtol=5e-2, atol=5e-2))

    # --- larger shape to exercise the multi-block (2 M-tiles) pipelined path --
    M2, K2, N2 = 1024, 1024, 256
    adj2_mask = jax.random.bernoulli(k_adj2, 0.05, (M2, K2)).astype(jnp.float32)
    adj2 = adj2_mask / jnp.maximum(adj2_mask.sum(axis=1, keepdims=True), 1.0)
    emb2 = jax.random.normal(k_emb2, (K2, N2), jnp.float32) * 0.1

    out2 = gcn_layer(adj2, emb2)
    jax.block_until_ready(out2)

    ref2 = adj2 @ emb2
    assert out2.shape == (M2, N2)
    assert bool(jnp.all(jnp.isfinite(out2)))
    assert bool(jnp.allclose(out2, ref2, rtol=5e-2, atol=5e-2))

    print("KERNEL_OK")
</pallas_src>

<mosaic_0001>
module attributes {stable_mosaic.version = 11 : i64} {
  func.func @_gcn_b_resident_kernel(%arg0: i32, %arg1: memref<16x128xf32, #tpu.memory_space<vmem>>, %arg2: memref<128x128xbf16, #tpu.memory_space<vmem>>, %arg3: memref<16x128xf32, #tpu.memory_space<vmem>>) attributes {dimension_semantics = [#tpu.dimension_semantics<parallel>], iteration_bounds = array<i64: 1>, scalar_prefetch = 0 : i64, scratch_operands = 0 : i64, tpu.core_type = #tpu.core_type<tc>, window_params = [{transform_indices = @transform_0, window_bounds = array<i64: 16, 128>}, {pipeline_mode = #tpu.pipeline_mode<synchronous>, transform_indices = @transform_1, window_bounds = array<i64: 128, 128>}, {transform_indices = @transform_2, window_bounds = array<i64: 16, 128>}]} {
    %c0 = arith.constant 0 : index
    %c0_0 = arith.constant 0 : index
    %0 = vector.load %arg1[%c0, %c0_0] : memref<16x128xf32, #tpu.memory_space<vmem>>, vector<16x128xf32>
    %1 = arith.truncf %0 : vector<16x128xf32> to vector<16x128xbf16>
    %c0_1 = arith.constant 0 : index
    %c0_2 = arith.constant 0 : index
    %2 = vector.load %arg2[%c0_1, %c0_2] : memref<128x128xbf16, #tpu.memory_space<vmem>>, vector<128x128xbf16>
    %cst = arith.constant dense<0.000000e+00> : vector<16x128xf32>
    %3 = tpu.matmul %1, %2, %cst {dimension_numbers = #tpu.dot_dimension_numbers<[1], [0], [0], [1], [0, 0, 1, 1], [], []>} : vector<16x128xbf16>, vector<128x128xbf16>, vector<16x128xf32> -> vector<16x128xf32>
    %c0_3 = arith.constant 0 : index
    %c0_4 = arith.constant 0 : index
    %4 = vector.load %arg3[%c0_3, %c0_4] : memref<16x128xf32, #tpu.memory_space<vmem>>, vector<16x128xf32>
    tpu.vector_store %arg3[%c0_3, %c0_4], %3 {strides = array<i32>} : memref<16x128xf32, #tpu.memory_space<vmem>>, vector<16x128xf32>,
    return
  }
  func.func @transform_0(%arg0: i32) -> (i32, i32) {
    %c0_i32 = arith.constant 0 : i32
    %c0_i32_0 = arith.constant 0 : i32
    return %arg0, %c0_i32 : i32, i32
  }
  func.func @transform_1(%arg0: i32) -> (i32, i32) {
    %c0_i32 = arith.constant 0 : i32
    %c0_i32_0 = arith.constant 0 : i32
    %c0_i32_1 = arith.constant 0 : i32
    return %c0_i32, %c0_i32_0 : i32, i32
  }
  func.func @transform_2(%arg0: i32) -> (i32, i32) {
    %c0_i32 = arith.constant 0 : i32
    %c0_i32_0 = arith.constant 0 : i32
    return %arg0, %c0_i32 : i32, i32
  }
}

</mosaic_0001>

<bundles_post_ra>
// kernel: gcn_layer.1
= control target key start
LH: loop header
LB: loop body
LE: loop exit
PB: predicated region body
PF: predicated region fallthrough
CT: control target
= control target key end

     0   :  { %v213_v1 = vmov 0.0   ;;  %vm214_vm0 = vmmov 0   ;;  %s275_s0 = inlined_call_operand.vmem [shape: f32[16,128], index: 0, kind: input, shape index: {}]   ;;  %s276_s1 = inlined_call_operand.vmem [shape: bf16[128,128], index: 1, kind: input, shape index: {}]   ;;  %s277_s2 = inlined_call_operand.hbm [shape: f32[16,128], index: 2, kind: output, shape index: {}]  }
   0x1   :  { %v181_v0 = vld [vmem:[%s276_s1] sm:$0xff]   ;;  %156 = vmatprep.subr.bf16.mxu0 %v213_v1  ;;  %v182_v2 = vld [vmem:[%s276_s1 + $0x8] sm:$0xff]   ;;  %172 = vmatprep.mubr.msk.bf16.mxu0 %vm214_vm0, %v213_v1  ;;  %v183_v3 = vld [vmem:[%s276_s1 + $0x10] sm:$0xff]  }
   0x2   :  { %157 = vmatpush3.bf16.msra.mxu0 %v181_v0 }
   0x3   :  { %158 = vmatprep.subr.bf16.mxu0 %v213_v1 }
   0x6   :  { %159 = vmatpush3.bf16.msra.mxu0 %v182_v2 }
   0x7   :  { %160 = vmatprep.subr.bf16.mxu0 %v213_v1 }
   0x8   :  { %7 = vsyncpa [#allocation3], 0  ;;  %v184_v4 = vld [vmem:[%s276_s1 + $0x18] sm:$0xff]   ;;  %v185_v5 = vld [vmem:[%s276_s1 + $0x20] sm:$0xff]   ;;  %s215_s29 = smov [#allocation2]  }
   0x9   :  { %v186_v6 = vld [vmem:[%s276_s1 + $0x28] sm:$0xff]   ;;  %v187_v7 = vld [vmem:[%s276_s1 + $0x30] sm:$0xff]   ;;  %v188_v8 = vld [vmem:[%s276_s1 + $0x38] sm:$0xff]   ;;  %s128_s30 = sshll.u32 %s215_s29, 4  ;;  %s129_s30 = int_to_ptr.vmem [resolvable:$true] %s128_s30 }
   0xa   :  { %161 = vmatpush3.bf16.msra.mxu0 %v183_v3  ;;  %v13_v9 = vld [vmem:[%s275_s0] sm:$0xff]  ;;  %v14_v10 = vld [vmem:[%s275_s0 + $0x8] sm:$0xff]  ;;  %s189_s1 = scalar_lea.vmem %s129_s30, 256  ;;  %p194_p1 = scmp.lt.s32.totalorder %s129_s30, %s129_s30 }
   0xb   :  { %162 = vmatprep.subr.bf16.mxu0 %v213_v1  ;;  %v15_v11 = vpack.c.bf16 %v14_v10, %v13_v9  ;;  %p190_p0 = scmp.ne.s32.totalorder %s129_s30, %s189_s1  ;;  %p195_p2 = scmp.lt.s32.totalorder %s189_s1, %s189_s1 }
   0xd   :  { %p196_p3 = por %p195_p2, %p194_p1 }
   0xe   :  { %163 = vmatpush3.bf16.msra.mxu0 %v184_v4 }
   0xf   :  { %164 = vmatprep.subr.bf16.mxu0 %v213_v1  ;;  %p197_p4 = pnand %p196_p3, %p190_p0 }
  0x12   :  { %165 = vmatpush3.bf16.msra.mxu0 %v185_v5 }
  0x13   :  { %166 = vmatprep.subr.bf16.mxu0 %v213_v1 }
  0x16   :  { %167 = vmatpush3.bf16.msra.mxu0 %v186_v6 }
  0x17   :  { %168 = vmatprep.subr.bf16.mxu0 %v213_v1 }
  0x1a   :  { %169 = vmatpush3.bf16.msra.mxu0 %v187_v7 }
  0x1b   :  { %170 = vmatprep.subr.bf16.mxu0 %v213_v1 }
  0x1e   :  { %171 = vmatpush3.bf16.msra.mxu0 %v188_v8 }
  0x21   :  { %173 = vmatmul.mubr.bf16.vlgmr.msra.gmra.mrb[0].mxu0 %v15_v11 }
  0xf4   :  { %v114_v12 = vpop.f32.mrb[0].mxu0 }
  0xf5   :  { %121 = vst [vmem:[#allocation2] sm:$0xff] %v114_v12  ;;  %v174_v13 = vpop.f32.mrb[1].mxu0 }
  0xf6   :  { %v117_v14 = vpop.f32.mrb[2].mxu0 }
  0xf7   :  { %122 = vst [vmem:[#allocation2 + $0x8] sm:$0xff] %v117_v14  ;;  %v175_v15 = vpop.f32.mrb[3].mxu0 }
  0xf8   :  { %200 = shalt.err (!%p197_p4)
}
  0xf9   :  { %s201_s4 = scalar_lea.hbm %s277_s2, 256 }
  0xfa   :  { %p202_p5 = scmp.ne.s32.totalorder %s277_s2, %s201_s4  ;;  %p205_p6 = scmp.lt.u32.totalorder %s201_s4, %s277_s2 }
  0xfc   :  { %p207_p7 = pnand %p205_p6, %p202_p5 }
  0xfe   :  { %210 = shalt.err (!%p207_p7)
}
  0xff   :  { %s216_s9 = smov 128   ;;  %s217_s10 = smov 8  }
 0x100   :  { %134 = dma.vmem_to_hbm [thread:$0]  %s129_s30, 256, %s277_s2, [#allocation3], %s216_s9, %s216_s9, %s217_s10  }
 0x101   :  { %211 = dma.done.wait [#allocation3], 256  }
 0x102   :  { %212 = vsyncadd [#allocation3], 4294967040 }
 0x103   :  { %138 = vsyncpa [#allocation3], 1 }

</bundles_post_ra>
